<compile_context>
chip_gen: v6e
topology: v6e:2x2x1
jax: 0.10.0
libtpu: 0.0.40
codegen_flags: <defaults>
</compile_context>

<pallas_src>
import jax
import jax.numpy as jnp
import numpy as np
from jax.experimental import pallas as pl
from jax.experimental.pallas import tpu as pltpu


def _round_up(x, m):
    return ((x + m - 1) // m) * m


def _mlp_kernel(x_ref, w1_ref, b1_ref, w2_ref, b2_ref, o_ref):
    # fc1: MXU matmul, f32 accumulation; bias + ReLU on the VPU in f32.
    h = jnp.dot(x_ref[...], w1_ref[...], preferred_element_type=jnp.float32)
    h = jnp.maximum(h + b1_ref[...], 0.0)
    # fc2: cast activations to the matmul dtype (no-op for f32), f32 accumulate.
    h = h.astype(w2_ref.dtype)
    y = jnp.dot(h, w2_ref[...], preferred_element_type=jnp.float32)
    # Lane-dense (multiple-of-128) unmasked store.
    o_ref[...] = (y + b2_ref[...]).astype(o_ref.dtype)


def prepare_params(w1, b1, w2, b2, *, matmul_dtype=jnp.float32):
    """One-time weight prep (hoisted out of the forward).

    w1: (input_dim, hidden_dim), b1: (1, hidden_dim),
    w2: (hidden_dim, output_dim), b2: (1, output_dim).
    Pads hidden/output dims up to multiples of 128 (exact: padded hidden
    columns give relu(0)=0 and the matching W2 rows are zero). Matmul operands
    may be stored in bf16 (recommended on v6e/v7x); biases stay f32.
    """
    input_dim, hidden_dim = w1.shape
    output_dim = w2.shape[1]
    h_pad = _round_up(max(hidden_dim, 1), 128)
    n_pad = _round_up(max(output_dim, 1), 128)

    def pad2(a, rows, cols, dtype):
        a = a.astype(dtype)
        if a.shape == (rows, cols):
            return a                      # skip the pad op when already aligned
        return jnp.zeros((rows, cols), dtype).at[:a.shape[0], :a.shape[1]].set(a)

    return {
        "w1": pad2(w1, input_dim, h_pad, matmul_dtype),
        "b1": pad2(b1, 1, h_pad, jnp.float32),
        "w2": pad2(w2, h_pad, n_pad, matmul_dtype),
        "b2": pad2(b2, 1, n_pad, jnp.float32),
        "dims": (input_dim, hidden_dim, output_dim),
    }


def gnn_policy_forward(x, params, *, block_m=None, trim_cols=True):
    """x: (B, input_dim). Returns (B, output_dim) f32 (or (B, n_pad) if
    trim_cols=False, letting the consumer read the lane-dense padded output)."""
    input_dim, hidden_dim, output_dim = params["dims"]
    w1p, b1p, w2p, b2p = params["w1"], params["b1"], params["w2"], params["b2"]
    h_pad, n_pad = w1p.shape[1], w2p.shape[1]
    mm_dtype = w1p.dtype

    B = x.shape[0]
    assert x.shape[1] == input_dim

    # Batch tiling: >=2 grid steps whenever possible (v7x: shard across both
    # TCs via the "parallel" axis), tile capped at 2048 rows (~ a couple MiB
    # per buffer even double-buffered, fits all generations incl. v7x 64 MiB).
    b8 = _round_up(max(B, 1), 8)
    if block_m is None:
        block_m = 8 if b8 <= 8 else min(2048, _round_up(pl.cdiv(b8, 2), 8))
    b_pad = _round_up(B, block_m)
    grid = (b_pad // block_m,)

    # Only pad batch rows of x (feature axis stays unpadded: the BlockSpec's
    # last dim equals the full array dim, so the (8,128) rule is satisfied).
    xp = x.astype(mm_dtype)
    if b_pad != B:
        xp = jnp.zeros((b_pad, input_dim), mm_dtype).at[:B].set(xp)

    mm_bytes = jnp.dtype(mm_dtype).itemsize
    cost = pl.CostEstimate(
        flops=2 * b_pad * (input_dim * h_pad + h_pad * n_pad),
        transcendentals=0,
        bytes_accessed=(b_pad * input_dim + input_dim * h_pad + h_pad * n_pad) * mm_bytes
        + (h_pad + n_pad) * 4 + b_pad * n_pad * 4,
    )

    out_padded = pl.pallas_call(
        _mlp_kernel,
        out_shape=jax.ShapeDtypeStruct((b_pad, n_pad), jnp.float32),
        grid_spec=pltpu.PrefetchScalarGridSpec(
            num_scalar_prefetch=0,
            grid=grid,
            in_specs=[
                pl.BlockSpec((block_m, input_dim), lambda i: (i, 0)),  # x tile (unpadded K)
                pl.BlockSpec((input_dim, h_pad), lambda i: (0, 0)),    # W1 (resident)
                pl.BlockSpec((1, h_pad), lambda i: (0, 0)),            # b1 (resident)
                pl.BlockSpec((h_pad, n_pad), lambda i: (0, 0)),        # W2 (resident)
                pl.BlockSpec((1, n_pad), lambda i: (0, 0)),            # b2 (resident)
            ],
            out_specs=pl.BlockSpec((block_m, n_pad), lambda i: (i, 0)),
        ),
        compiler_params=pltpu.CompilerParams(
            dimension_semantics=("parallel",),   # batch tiles shard across TCs
        ),
        cost_estimate=cost,
    )(xp, w1p, b1p, w2p, b2p)

    out = out_padded[:B] if b_pad != B else out_padded   # row slice: cheap
    if trim_cols and n_pad != output_dim:
        out = out[:, :output_dim]   # skip this pass by fusing the consumer (trim_cols=False)
    return out


def init_params(key, input_dim, hidden_dim=128, output_dim=64):
    """Deterministic init mimicking nn.Linear's U(-1/sqrt(fan_in), 1/sqrt(fan_in))."""
    k1, k2, k3, k4 = jax.random.split(key, 4)
    bound1 = 1.0 / np.sqrt(input_dim)
    bound2 = 1.0 / np.sqrt(hidden_dim)
    # Stored transposed relative to PyTorch's (out_features, in_features).
    w1 = jax.random.uniform(k1, (input_dim, hidden_dim), jnp.float32, -bound1, bound1)
    b1 = jax.random.uniform(k2, (1, hidden_dim), jnp.float32, -bound1, bound1)
    w2 = jax.random.uniform(k3, (hidden_dim, output_dim), jnp.float32, -bound2, bound2)
    b2 = jax.random.uniform(k4, (1, output_dim), jnp.float32, -bound2, bound2)
    return w1, b1, w2, b2


if __name__ == "__main__":
    key = jax.random.PRNGKey(0)
    kx, kp = jax.random.split(key)

    batch = 16          # e.g. number of graph nodes / states
    input_dim = 32
    hidden_dim = 128
    output_dim = 64

    x = jax.random.normal(kx, (batch, input_dim), jnp.float32)
    w1, b1, w2, b2 = init_params(kp, input_dim, hidden_dim, output_dim)

    # Pure-JAX reference of the module's forward.
    ref = jnp.maximum(x @ w1 + b1, 0.0) @ w2 + b2

    # f32 path: exact match with the PyTorch module.
    params_f32 = prepare_params(w1, b1, w2, b2, matmul_dtype=jnp.float32)
    out = jax.block_until_ready(gnn_policy_forward(x, params_f32))
    np.testing.assert_allclose(np.asarray(out), np.asarray(ref), rtol=1e-5, atol=1e-5)
    assert out.shape == (batch, output_dim) and out.dtype == jnp.float32

    # bf16-operand path (recommended on v6e/v7x): same kernel, looser tolerance.
    params_bf16 = prepare_params(w1, b1, w2, b2, matmul_dtype=jnp.bfloat16)
    out_bf16 = jax.block_until_ready(gnn_policy_forward(x, params_bf16))
    np.testing.assert_allclose(np.asarray(out_bf16), np.asarray(ref), rtol=5e-2, atol=5e-2)
    assert out_bf16.shape == (batch, output_dim) and out_bf16.dtype == jnp.float32

    print("KERNEL_OK")
</pallas_src>

<mosaic_0001>
module attributes {stable_mosaic.version = 11 : i64} {
  func.func @_mlp_kernel(%arg0: i32, %arg1: memref<8x32xf32, #tpu.memory_space<vmem>>, %arg2: memref<32x128xf32, #tpu.memory_space<vmem>>, %arg3: memref<1x128xf32, #tpu.memory_space<vmem>>, %arg4: memref<128x128xf32, #tpu.memory_space<vmem>>, %arg5: memref<1x128xf32, #tpu.memory_space<vmem>>, %arg6: memref<8x128xf32, #tpu.memory_space<vmem>>) attributes {dimension_semantics = [#tpu.dimension_semantics<parallel>], iteration_bounds = array<i64: 2>, scalar_prefetch = 0 : i64, scratch_operands = 0 : i64, tpu.core_type = #tpu.core_type<tc>, window_params = [{transform_indices = @transform_0, window_bounds = array<i64: 8, 32>}, {pipeline_mode = #tpu.pipeline_mode<synchronous>, transform_indices = @transform_1, window_bounds = array<i64: 32, 128>}, {pipeline_mode = #tpu.pipeline_mode<synchronous>, transform_indices = @transform_2, window_bounds = array<i64: 1, 128>}, {pipeline_mode = #tpu.pipeline_mode<synchronous>, transform_indices = @transform_3, window_bounds = array<i64: 128, 128>}, {pipeline_mode = #tpu.pipeline_mode<synchronous>, transform_indices = @transform_4, window_bounds = array<i64: 1, 128>}, {transform_indices = @transform_5, window_bounds = array<i64: 8, 128>}]} {
    %c0 = arith.constant 0 : index
    %c0_0 = arith.constant 0 : index
    %0 = vector.load %arg1[%c0, %c0_0] : memref<8x32xf32, #tpu.memory_space<vmem>>, vector<8x32xf32>
    %c0_1 = arith.constant 0 : index
    %c0_2 = arith.constant 0 : index
    %1 = vector.load %arg2[%c0_1, %c0_2] : memref<32x128xf32, #tpu.memory_space<vmem>>, vector<32x128xf32>
    %cst = arith.constant dense<0.000000e+00> : vector<8x128xf32>
    %2 = tpu.matmul %0, %1, %cst {dimension_numbers = #tpu.dot_dimension_numbers<[1], [0], [0], [1], [0, 0, 1, 1], [], []>} : vector<8x32xf32>, vector<32x128xf32>, vector<8x128xf32> -> vector<8x128xf32>
    %c0_3 = arith.constant 0 : index
    %c0_4 = arith.constant 0 : index
    %3 = vector.load %arg3[%c0_3, %c0_4] : memref<1x128xf32, #tpu.memory_space<vmem>>, vector<1x128xf32>
    %4 = vector.broadcast %3 : vector<1x128xf32> to vector<8x128xf32>
    %5 = arith.addf %2, %4 : vector<8x128xf32>
    %cst_5 = arith.constant 0.000000e+00 : f32
    %6 = vector.broadcast %cst_5 : f32 to vector<8x128xf32>
    %7 = arith.maximumf %5, %6 : vector<8x128xf32>
    %c0_6 = arith.constant 0 : index
    %c0_7 = arith.constant 0 : index
    %8 = vector.load %arg4[%c0_6, %c0_7] : memref<128x128xf32, #tpu.memory_space<vmem>>, vector<128x128xf32>
    %cst_8 = arith.constant dense<0.000000e+00> : vector<8x128xf32>
    %9 = tpu.matmul %7, %8, %cst_8 {dimension_numbers = #tpu.dot_dimension_numbers<[1], [0], [0], [1], [0, 0, 1, 1], [], []>} : vector<8x128xf32>, vector<128x128xf32>, vector<8x128xf32> -> vector<8x128xf32>
    %c0_9 = arith.constant 0 : index
    %c0_10 = arith.constant 0 : index
    %10 = vector.load %arg5[%c0_9, %c0_10] : memref<1x128xf32, #tpu.memory_space<vmem>>, vector<1x128xf32>
    %11 = vector.broadcast %10 : vector<1x128xf32> to vector<8x128xf32>
    %12 = arith.addf %9, %11 : vector<8x128xf32>
    %c0_11 = arith.constant 0 : index
    %c0_12 = arith.constant 0 : index
    %13 = vector.load %arg6[%c0_11, %c0_12] : memref<8x128xf32, #tpu.memory_space<vmem>>, vector<8x128xf32>
    tpu.vector_store %arg6[%c0_11, %c0_12], %12 {strides = array<i32>} : memref<8x128xf32, #tpu.memory_space<vmem>>, vector<8x128xf32>,
    return
  }
  func.func @transform_0(%arg0: i32) -> (i32, i32) {
    %c0_i32 = arith.constant 0 : i32
    %c0_i32_0 = arith.constant 0 : i32
    return %arg0, %c0_i32 : i32, i32
  }
  func.func @transform_1(%arg0: i32) -> (i32, i32) {
    %c0_i32 = arith.constant 0 : i32
    %c0_i32_0 = arith.constant 0 : i32
    %c0_i32_1 = arith.constant 0 : i32
    return %c0_i32, %c0_i32_0 : i32, i32
  }
  func.func @transform_2(%arg0: i32) -> (i32, i32) {
    %c0_i32 = arith.constant 0 : i32
    %c0_i32_0 = arith.constant 0 : i32
    %c0_i32_1 = arith.constant 0 : i32
    return %c0_i32, %c0_i32_0 : i32, i32
  }
  func.func @transform_3(%arg0: i32) -> (i32, i32) {
    %c0_i32 = arith.constant 0 : i32
    %c0_i32_0 = arith.constant 0 : i32
    %c0_i32_1 = arith.constant 0 : i32
    return %c0_i32, %c0_i32_0 : i32, i32
  }
  func.func @transform_4(%arg0: i32) -> (i32, i32) {
    %c0_i32 = arith.constant 0 : i32
    %c0_i32_0 = arith.constant 0 : i32
    %c0_i32_1 = arith.constant 0 : i32
    return %c0_i32, %c0_i32_0 : i32, i32
  }
  func.func @transform_5(%arg0: i32) -> (i32, i32) {
    %c0_i32 = arith.constant 0 : i32
    %c0_i32_0 = arith.constant 0 : i32
    return %arg0, %c0_i32 : i32, i32
  }
}

</mosaic_0001>

<bundles_post_ra>
// kernel: tpu_custom_call.1
= control target key start
LH: loop header
LB: loop body
LE: loop exit
PB: predicated region body
PF: predicated region fallthrough
CT: control target
= control target key end

     0   :  { %10 = vsyncpa [#allocation3], 0  ;;  %s1102_s0 = inlined_call_operand.hbm [shape: f32[16,32], index: 0, kind: input, shape index: {}]   ;;  %s1103_s1 = inlined_call_operand.hbm [shape: f32[32,128], index: 1, kind: input, shape index: {}]   ;;  %s1104_s2 = inlined_call_operand.vmem [shape: f32[1,128], index: 2, kind: input, shape index: {}]   ;;  %s1105_s3 = inlined_call_operand.hbm [shape: f32[128,128], index: 3, kind: input, shape index: {}]   ;;  %s1106_s4 = inlined_call_operand.vmem [shape: f32[1,128], index: 4, kind: input, shape index: {}]   ;;  %s1107_s5 = inlined_call_operand.hbm [shape: f32[16,128], index: 5, kind: output, shape index: {}]  }
   0x1   :  { %12 = vsyncpa [#allocation3 + $0x1], 0 }
   0x2   :  { %13 = vsyncpa [#allocation6], 0 }
   0x3   :  { %14 = vsyncpa [#allocation4], 0 }
   0x4   :  { %16 = vsyncpa [#allocation4 + $0x1], 0  ;;  %s899_s18 = smov 0   ;;  %s901_s19 = smov 0  }
   0x5   :  { %s903_s20 = smov 0   ;;  %s905_s21 = smov 0  }
   0x6 LB: > { %s920_s22 = sadd.s32 4294967295, %s859_s21   ;;  %s553_s23 = sadd.s32 4294967294, %s859_s21   ;;  %s859_s21 = sphi %s905_s21, %s1129_s21   ;;  %s855_s20 = sphi %s903_s20, %s1128_s20   ;;  %s851_s19 = sphi %s901_s19, %s1127_s19   ;;  %s847_s18 = sphi %s899_s18, %s1126_s18  }
   0x7   : > { %p42_p0 = scmp.ne.s32.totalorder %s851_s19, %s847_s18  ;;  %p1108_p1 = scmp.eq.s32.totalorder %s920_s22, 0 }
   0x8   : > { %p156_p3 = scmp.eq.s32.totalorder %s553_s23, 1  ;;  %p554_p5 = scmp.ge.s32.totalorder %s859_s21, 1 }
   0x9   : > { %p929_p4 = por %p1108_p1, %p42_p0  ;;  %p163_p7 = scmp.lt.s32.totalorder %s859_s21, 3 }
   0xa   : > { %p934_p6 = por %p156_p3, %p42_p0  ;;  %s861_s27 = smov [#allocation5]  }
   0xb   : > { %s1112_s24 = scalar_select %p929_p4, 1, 0 }
   0xc   : > { %s1113_s25 = scalar_select %p934_p6, 1, 0 }
   0xd   : > { %p939_p8 = pnand %p554_p5, %p163_p7  ;;  %s175_s28 = sshll.u32 %s861_s27, 4  ;;  %s176_s28 = int_to_ptr.vmem [resolvable:$true] %s175_s28 }
   0xe   : > { %s862_s30 = smov [#allocation7]   ;;  %s722_s7 = scalar_lea.vmem %s176_s28, 512 }
   0xf   : > { %s1114_s26 = scalar_select %p939_p8, 1, 0 }
  0x10   : > { %p652_p9 = pneg %p939_p8  ;;  %s191_s6 = sshll.u32 %s862_s30, 4  ;;  %s192_s6 = int_to_ptr.vmem [resolvable:$true] %s191_s6 }
  0x11   : > { %p723_p13 = scmp.ne.s32.totalorder %s176_s28, %s722_s7  ;;  %p730_p5 = scmp.lt.s32.totalorder %s176_s28, %s176_s28 }
  0x12   : > { %p948_p11 = pnand %p652_p9, %p1108_p1  ;;  %p731_p7 = scmp.lt.s32.totalorder %s722_s7, %s722_s7 }
  0x14   : > { %p713_p12 = pneg %p948_p11  ;;  %p732_p10 = por %p731_p7, %p730_p5 }
  0x16   : > { %p725_p0 = pnand %p723_p13, %p713_p12 }
  0x18   : > { %p726_p3 = pneg %p725_p0 }
  0x1a   : > { %p733_p9 = pnand %p732_p10, %p726_p3 }
  0x1c   : > { %736 = shalt.err (!%p733_p9)
}
  0x1d   : > { %s863_s8 = smov 128   ;;  %s864_s9 = smov 8  }
  0x1e   : > { %655 = dma.hbm_to_vmem [thread:$0]  (!%p948_p11), %s1103_s1, 512, %s176_s28, [#allocation6], %s863_s8, %s863_s8, %s864_s9  }
  0x1f   : > { %s748_s12 = scalar_lea.vmem %s192_s6, 2048  ;;  %p756_p2 = scmp.lt.s32.totalorder %s192_s6, %s192_s6 }
  0x20   : > { %p749_p1 = scmp.ne.s32.totalorder %s192_s6, %s748_s12  ;;  %p757_p6 = scmp.lt.s32.totalorder %s748_s12, %s748_s12 }
  0x22   : > { %p751_p13 = pnand %p749_p1, %p713_p12  ;;  %p758_p5 = por %p757_p6, %p756_p2 }
  0x24   : > { %p752_p0 = pneg %p751_p13 }
  0x26   : > { %p759_p10 = pnand %p758_p5, %p752_p0 }
  0x28   : > { %762 = shalt.err (!%p759_p10)
}
  0x29   : > { %658 = dma.hbm_to_vmem [thread:$0]  (!%p948_p11), %s1105_s3, 2048, %s192_s6, [#allocation6], %s863_s8, %s863_s8, %s864_s9  }
  0x2a   : > { %s971_s15 = sadd.s32 1, %s859_s21   ;;  %s29_s16 = sadd.s32 1, %s855_s20 }
  0x2b   : > { %s26_s17 = ssub.s32 %s859_s21, %s971_s15  ;;  %p36_p1 = scmp.ne.s32.totalorder %s855_s20, %s851_s19 }
  0x2c   : > { %p27_p2 = scmp.eq.s32.totalorder %s26_s17, 0  ;;  %p37_p6 = scmp.eq.s32.totalorder %s859_s21, 0 }
  0x2d   : > { %p1116_p12 = scmp.eq.s32.totalorder %s920_s22, 1  ;;  %p669_p7 = scmp.lt.s32.totalorder %s859_s21, 2 }
  0x2e   : > { %s987_s27 = scalar_select %p27_p2, %s855_s20, %s29_s16  }
  0x2f   : > { %p981_p3 = por %p1116_p12, %p36_p1  ;;  %p38_p9 = por %p37_p6, %p36_p1 }
  0x30   : > { %s208_s28 = sand.u32 1, %s855_s20   ;;  %s559_s30 = sshll.u32 %s859_s21, 7 }
  0x31   : > { %s1117_s23 = scalar_select %p981_p3, 1, 0 }
  0x32   : > { %s558_s29 = sshll.u32 %s208_s28, 3  ;;  %s994_s8 = scalar_lea.hbm %s1102_s0, %s559_s30 }
  0x33   : > { %s212_s9 = scalar_lea.vmem [#allocation2], %s558_s29  ;;  %p996_p11 = pnand %p669_p7, %p38_p9 }
  0x34   : > { %s219_s10 = sshll.u32 %s212_s9, 4  ;;  %s209_s12 = scalar_lea.sflag [#allocation3], %s208_s28  ;;  %s220_s10 = int_to_ptr.vmem [resolvable:$true] %s219_s10 }
  0x35   : > { %s763_s13 = scalar_lea.hbm %s994_s8, 128  ;;  %p765_p0 = pneg %p996_p11 }
  0x36   : > { %p764_p13 = scmp.ne.s32.totalorder %s994_s8, %s763_s13  ;;  %s768_s17 = scalar_lea.hbm %s1102_s0, 256 }
  0x37   : > { %p769_p1 = scmp.lt.s32.totalorder %s994_s8, %s1102_s0  ;;  %p770_p2 = scmp.lt.s32.totalorder %s768_s17, %s763_s13 }
  0x38   : > { %p766_p5 = pnand %p765_p0, %p764_p13 }
  0x39   : > { %p771_p6 = por %p770_p2, %p769_p1 }
  0x3a   : > { %p767_p10 = pneg %p766_p5 }
  0x3c   : > { %p772_p12 = pnand %p771_p6, %p767_p10 }
  0x3e   : > { %775 = shalt.err (!%p772_p12)
}
  0x3f   : > { %s776_s6 = scalar_lea.vmem %s220_s10, 128  ;;  %s865_s28 = smov [#allocation2]  }
  0x40   : > { %p777_p7 = scmp.ne.s32.totalorder %s220_s10, %s776_s6  ;;  %s781_s7 = sshll.u32 %s865_s28, 4  ;;  %s782_s7 = int_to_ptr.vmem [resolvable:$false] %s781_s7 }
  0x41   : > { %s783_s9 = scalar_lea.vmem %s782_s7, 256  ;;  %p784_p13 = scmp.lt.s32.totalorder %s220_s10, %s782_s7 }
  0x42   : > { %p779_p9 = pnand %p777_p7, %p765_p0  ;;  %p785_p5 = scmp.lt.s32.totalorder %s783_s9, %s776_s6 }
  0x44   : > { %p780_p3 = pneg %p779_p9  ;;  %p786_p4 = por %p785_p5, %p784_p13 }
  0x46   : > { %p787_p8 = pnand %p786_p4, %p780_p3 }
  0x48   : > { %790 = shalt.err (!%p787_p8)
}
  0x49   : > { %662 = dma.hbm_to_vmem [thread:$0]  (!%p996_p11), %s994_s8, 128, %s220_s10, %s209_s12  }
  0x4a   : > { %p1119_p10 = scmp.ne.s32.totalorder %s1114_s26, 0 }
  0x4b   : > { %s1017_s13 = sand.u32 (!%p1119_p10), 1, %s851_s19   ;;  %p1120_p4 = scmp.ne.s32.totalorder (!%p1119_p10), %s1112_s24, 0 }
  0x4c   : > { %228 = sbr.rel (%p1119_p10) target bundleno = 500 (0x1f4), region = 40  ;;  %s561_s14 = sshll.u32 (!%p1119_p10), %s1017_s13, 3 }
  0x4d   : > { %s231_s16 = scalar_lea.sflag (!%p1119_p10), [#allocation3], %s1017_s13  ;;  %s234_s17 = scalar_lea.vmem (!%p1119_p10), [#allocation2], %s561_s14 }
  0x51   : > { %834 = dma.done.wait (%p1120_p4), %s231_s16, 128  }
  0x52   : > { %836 = vsyncadd (%p1120_p4), %s231_s16, 4294967168  ;;  %p1121_p8 = scmp.eq.s32.totalorder %s920_s22, 0 }
  0x54   : > { %838 = dma.done.wait (%p1121_p8), [#allocation6], 2560   ;;  %p1122_p3 = pmov %p1121_p8 }
  0x55   : > { %v866_v0 = vmov 0.0   ;;  %vm867_vm0 = vmmov 0   ;;  %v273_v1 = vld [vmem:[#allocation5 + $0x18] sm:$0xff]  ;;  %v272_v2 = vld [vmem:[#allocation5 + $0x10] sm:$0xff]  ;;  %v271_v4 = vld [vmem:[#allocation5 + $0x8] sm:$0xff]  ;;  %vm281_vm1 = vcmask 261120  }
  0x56   : > { %840 = vsyncadd (%p1122_p3), [#allocation6], 4294964736  ;;  %594 = vmatprep.subr.mxu0 %v866_v0  ;;  %602 = vmatprep.mubr.msk.f32.mxu0 %vm867_vm0, %v866_v0  ;;  %v371_v3 = vld [vmem:[#allocation7 + $0x78] sm:$0xff]  ;;  %v370_v5 = vld [vmem:[#allocation7 + $0x70] sm:$0xff]  ;;  %s569_s11 = sshll.u32 %s920_s22, 7  ;;  %s268_s12 = scalar_lea.vmem [#allocation8], %s561_s14 }
  0x57   : > { %605 = vmatprep.subr.mxu1 %v866_v0  ;;  %637 = vmatprep.mubr.msk.f32.mxu1 %vm867_vm0, %v866_v0  ;;  %v369_v6 = vld [vmem:[#allocation7 + $0x68] sm:$0xff]  ;;  %v270_v7 = vld [vmem:[#allocation5] sm:$0xff]  ;;  %v269_v8 = vld [vmem:[%s234_s17] sm:$0xff]  ;;  %s464_s30 = sshll.u32 %s268_s12, 4  ;;  %s1065_s28 = scalar_lea.hbm %s1107_s5, %s569_s11  ;;  %s465_s30 = int_to_ptr.vmem [resolvable:$true] %s464_s30 }
  0x58   : > { %595 = vmatpush3.msra.mxu0 %v273_v1  ;;  %606 = vmatpush3.msra.mxu1 %v371_v3  ;;  %v368_v9 = vld [vmem:[#allocation7 + $0x60] sm:$0xff]  ;;  %v367_v10 = vld [vmem:[#allocation7 + $0x58] sm:$0xff]  ;;  %v366_v11 = vld [vmem:[#allocation7 + $0x50] sm:$0xff]  ;;  %s451_s7 = scalar_lea.sflag [#allocation4], %s1017_s13  ;;  %s791_s9 = scalar_lea.vmem %s465_s30, 128 }
  0x59   : > { %596 = vmatprep.subr.mxu0 %v866_v0  ;;  %607 = vmatprep.subr.mxu1 %v866_v0  ;;  %v365_v12 = vld [vmem:[#allocation7 + $0x48] sm:$0xff]  ;;  %v364_v13 = vld [vmem:[#allocation7 + $0x40] sm:$0xff]  ;;  %v363_v14 = vld [vmem:[#allocation7 + $0x38] sm:$0xff]  ;;  %p792_p11 = scmp.ne.s32.totalorder %s465_s30, %s791_s9  ;;  %p1123_p0 = scmp.ne.s32.totalorder %s1117_s23, 0 }
  0x5a   : > { %597 = vmatpush3.msra.mxu0 %v272_v2  ;;  %608 = vmatpush3.msra.mxu1 %v370_v5  ;;  %v362_v15 = vld [vmem:[#allocation7 + $0x30] sm:$0xff]  ;;  %v361_v16 = vld [vmem:[#allocation7 + $0x28] sm:$0xff]  ;;  %v360_v17 = vld [vmem:[#allocation7 + $0x20] sm:$0xff]  ;;  %s868_s22 = smov [#allocation8]  }
  0x5b   : > { %598 = vmatprep.subr.mxu0 %v866_v0  ;;  %609 = vmatprep.subr.mxu1 %v866_v0  ;;  %v359_v18 = vld [vmem:[#allocation7 + $0x18] sm:$0xff]  ;;  %v358_v19 = vld [vmem:[#allocation7 + $0x10] sm:$0xff]  ;;  %v357_v20 = vld [vmem:[#allocation7 + $0x8] sm:$0xff]  ;;  %p793_p1 = pnand %p792_p11, %p1123_p0  ;;  %s795_s16 = sshll.u32 %s868_s22, 4  ;;  %s796_s16 = int_to_ptr.vmem [resolvable:$false] %s795_s16 }
  0x5c   : > { %599 = vmatpush3.msra.mxu0 %v271_v4  ;;  %610 = vmatpush3.msra.mxu1 %v369_v6  ;;  %v356_v21 = vld [vmem:[#allocation7] sm:$0xff]  ;;  %v565_v22 = vld [vmem:[%s1104_s2] ss:$0 sm:$0xff]  ;;  %s797_s14 = scalar_lea.vmem %s796_s16, 256  ;;  %p798_p6 = scmp.lt.s32.totalorder %s465_s30, %s796_s16 }
  0x5d   : > { %600 = vmatprep.subr.mxu0 %v866_v0  ;;  %611 = vmatprep.subr.mxu1 %v866_v0  ;;  %v567_v27 = vld [vmem:[%s1106_s4] ss:$0 sm:$0xff]  ;;  %p794_p2 = pneg %p793_p1  ;;  %p799_p12 = scmp.lt.s32.totalorder %s797_s14, %s791_s9 }
  0x5e   : > { %601 = vmatpush3.msra.mxu0 %v270_v7  ;;  %612 = vmatpush3.msra.mxu1 %v368_v9 }
  0x5f   : > { %603 = vmatmul.mubr.msk.f32.vlgmr.msra.gmra.mxu0 %vm281_vm1, %v269_v8  ;;  %613 = vmatprep.subr.mxu1 %v866_v0  ;;  %p800_p7 = por %p799_p12, %p798_p6 }
  0x60   : > { %614 = vmatpush3.msra.mxu1 %v367_v10 }
  0x61   : > { %615 = vmatprep.subr.mxu1 %v866_v0  ;;  %p801_p9 = pnand %p800_p7, %p794_p2 }
  0x62   : > { %616 = vmatpush3.msra.mxu1 %v366_v11 }
  0x63   : > { %617 = vmatprep.subr.mxu1 %v866_v0 }
  0x64   : > { %618 = vmatpush3.msra.mxu1 %v365_v12 }
  0x65   : > { %619 = vmatprep.subr.mxu1 %v866_v0 }
  0x66   : > { %620 = vmatpush3.msra.mxu1 %v364_v13 }
  0x67   : > { %621 = vmatprep.subr.mxu1 %v866_v0 }
  0x68   : > { %622 = vmatpush3.msra.mxu1 %v363_v14 }
  0x69   : > { %623 = vmatprep.subr.mxu1 %v866_v0 }
  0x6a   : > { %624 = vmatpush3.msra.mxu1 %v362_v15 }
  0x6b   : > { %625 = vmatprep.subr.mxu1 %v866_v0 }
  0x6c   : > { %626 = vmatpush3.msra.mxu1 %v361_v16 }
  0x6d   : > { %627 = vmatprep.subr.mxu1 %v866_v0 }
  0x6e   : > { %628 = vmatpush3.msra.mxu1 %v360_v17 }
  0x6f   : > { %629 = vmatprep.subr.mxu1 %v866_v0 }
  0x70   : > { %630 = vmatpush3.msra.mxu1 %v359_v18 }
  0x71   : > { %631 = vmatprep.subr.mxu1 %v866_v0 }
  0x72   : > { %632 = vmatpush3.msra.mxu1 %v358_v19 }
  0x73   : > { %633 = vmatprep.subr.mxu1 %v866_v0 }
  0x74   : > { %634 = vmatpush3.msra.mxu1 %v357_v20 }
  0x75   : > { %635 = vmatprep.subr.mxu1 %v866_v0 }
  0x76   : > { %636 = vmatpush3.msra.mxu1 %v356_v21 }
 0x11f   : > { %v351_v23 = vpop.f32.mrf.mxu0 }
 0x120   : > { %v352_v24 = vadd.f32 %v565_v22, %v351_v23 }
 0x121   : > { %v604_v25 = vpop.f32.mrf.mxu0 }
 0x122   : > { %v355_v26 = vmax.f32 %v352_v24, 0.0 }
 0x124   : > { %638 = vmatmul.mubr.f32.vlgmr.msra.gmra.mxu1 %v355_v26 }
 0x1e4   : > { %v445_v28 = vpop.f32.mrf.mxu1 }
 0x1e5   : > { %v446_v29 = vadd.f32 %v567_v27, %v445_v28 }
 0x1e6   : > { %v639_v30 = vpop.f32.mrf.mxu1 }
 0x1e7   : > { %449 = vst [vmem:[%s268_s12] sm:$0xff] %v446_v29 }
 0x1e8   : > { %804 = shalt.err (!%p801_p9)
}
 0x1e9   : > { %s805_s17 = scalar_lea.hbm %s1065_s28, 128  ;;  %s809_s26 = scalar_lea.hbm %s1107_s5, 256 }
 0x1ea   : > { %p806_p13 = scmp.ne.s32.totalorder %s1065_s28, %s805_s17  ;;  %p810_p4 = scmp.lt.s32.totalorder %s1065_s28, %s1107_s5 }
 0x1eb   : > { %p811_p8 = scmp.lt.s32.totalorder %s809_s26, %s805_s17 }
 0x1ec   : > { %p807_p5 = pnand %p806_p13, %p1123_p0 }
 0x1ed   : > { %p812_p3 = por %p811_p8, %p810_p4 }
 0x1ee   : > { %p808_p10 = pneg %p807_p5 }
 0x1f0   : > { %p813_p11 = pnand %p812_p3, %p808_p10 }
 0x1f2   : > { %816 = shalt.err (!%p813_p11)
}
 0x1f3   : > { %650 = dma.vmem_to_hbm [thread:$0]  (%p1123_p0), %s465_s30, 128, %s1065_s28, %s451_s7  }
 0x1f4 PF: > { %s476_s11 = sand.u32 1, %s847_s18   ;;  %p1124_p1 = scmp.ne.s32.totalorder %s1113_s25, 0 }
 0x1f5   : > { %p1125_p2 = scmp.ge.s32.totalorder %s859_s21, 2  ;;  %s477_s12 = scalar_lea.sflag [#allocation4], %s476_s11 }
 0x1f7   : > { %p664_p6 = pnand %p1125_p2, %p1124_p1 }
 0x1f9   : > { %p665_p12 = pneg %p664_p6 }
 0x1fb   : > { %842 = dma.done.wait (%p665_p12), %s477_s12, 128  }
 0x1fc   : > { %844 = vsyncadd (%p665_p12), %s477_s12, 4294967168  ;;  %p19_p7 = scmp.ge.s32.totalorder %s971_s15, 4   ;;  %s1126_s18 = smov %s851_s19 }
 0x1fd   : > { %s1127_s19 = smov %s855_s20  ;;  %s1128_s20 = smov %s987_s27 }
 0x1fe   : > { %s1129_s21 = smov %s971_s15  ;;  %21 = sbr.rel (!%p19_p7) target bundleno = 6 (0x6), region = 93 }
 0x203   :  { %482 = vsyncpa [#allocation3], 1 }
 0x204   :  { %484 = vsyncpa [#allocation3 + $0x1], 1 }
 0x205   :  { %485 = vsyncpa [#allocation6], 1 }
 0x206   :  { %486 = vsyncpa [#allocation4], 1 }
 0x207   :  { %488 = vsyncpa [#allocation4 + $0x1], 1 }

</bundles_post_ra>
